<compile_context>
chip_gen: v6e
topology: v6e:2x2x1
jax: 0.10.0
libtpu: 0.0.40
codegen_flags: <defaults>
</compile_context>

<pallas_src>
import functools

import jax
import jax.numpy as jnp
from jax.experimental import pallas as pl
from jax.experimental.pallas import tpu as pltpu


def _round_up(x, m):
    return (x + m - 1) // m * m


def _dilated_conv_block_kernel(xm_ref, xh_ref, wconv_ref, bconv_ref, wproj_ref,
                               bproj_ref, out_ref, *, kernel_size, dilation,
                               pad, tt, gate_ch, cres, cout_p):
    """One (batch, time-tile) block per grid step.

    xm_ref   : (1, TT, Cin)  bf16  main tile of the padded NTC input
    xh_ref   : (1, H, Cin)   bf16  right halo tile (H >= 2*pad, H | TT)
    wconv_ref: (K*Cin, 2G)   bf16  folded gate|filter conv weight (resident)
    bconv_ref: (1, 2G)       f32   fused conv bias
    wproj_ref: (G, Cp)       bf16  fused res|skip 1x1 weight (resident)
    bproj_ref: (1, Cp)       f32   fused res|skip bias
    out_ref  : (1, TT, Cp)   bf16  fused res|skip output
    """
    # Stitch the halo'd window once (sublane-aligned concat: TT % 16 == 0).
    win = jnp.concatenate([xm_ref[0], xh_ref[0]], axis=0)       # (TT+H, Cin)

    # Folded dilated conv: lane-concat the K dilated shifts and run a single
    # MXU contraction over K*Cin instead of K under-filled matmuls.
    conv_in = jnp.concatenate(
        [win[j * dilation:j * dilation + tt, :] for j in range(kernel_size)],
        axis=-1)                                                # (TT, K*Cin) bf16
    acc = jnp.dot(conv_in, wconv_ref[...],
                  preferred_element_type=jnp.float32)           # (TT, 2G) f32
    acc = acc + bconv_ref[0, :]                                 # bias once, at the end

    # Gated activation unit. torch.split order: first G = gate, last G = filter.
    gate = acc[:, :gate_ch]
    filt = acc[:, gate_ch:]
    # sigmoid(g) = 0.5*tanh(0.5*g) + 0.5: one EUP push (f32, v5e-portable).
    act = jnp.tanh(filt) * (0.5 * jnp.tanh(0.5 * gate) + 0.5)   # (TT, G) f32
    # TODO(synk): nn.Dropout is identity here (p=0.0 default / eval mode).

    # Fused residual|skip 1x1 projection; residual add is a plain VPU add into
    # the first Cres lanes (no identity-scatter matmul).
    proj = jnp.dot(act.astype(jnp.bfloat16), wproj_ref[...],
                   preferred_element_type=jnp.float32)          # (TT, Cp) f32
    resid = win[pad:pad + tt, :].astype(jnp.float32)            # (TT, Cres)
    if cout_p > cres:
        resid = jnp.concatenate(
            [resid, jnp.zeros((tt, cout_p - cres), jnp.float32)], axis=-1)
    out_ref[0] = (proj + resid + bproj_ref[0, :]).astype(out_ref.dtype)


@functools.partial(jax.jit,
                   static_argnames=("kernel_size", "dilation", "time_tile"))
def dilated_conv_block_ntc(x_ntc, params, *, kernel_size, dilation,
                           time_tile=512):
    """Channels-last core: x_ntc (B, T, Cres) -> (res_ntc, skip_ntc) in bf16.

    Stacked WaveNet blocks should call this directly and skip the NCT<->NTC
    boundary transposes of the PyTorch-facing wrapper.
    """
    w_conv, b_conv, w_res, b_res, w_skip, b_skip = params
    B, T, Cin = x_ntc.shape
    two_g, cin_w, K = w_conv.shape
    G = two_g // 2
    Cres, Cskip = w_res.shape[0], w_skip.shape[0]
    assert cin_w == Cin == Cres and K == kernel_size
    # Same-length output only when (K-1)*dilation is even (matches the torch
    # module's padding formula for the configurations it is used with).
    assert (kernel_size - 1) * dilation % 2 == 0

    pad = (kernel_size * dilation - dilation) // 2

    # ---- time tiling (tt multiple of 16 for bf16 sublane packing) ----
    tt = _round_up(max(16, min(time_tile, _round_up(T, 16))), 16)
    tt = max(tt, _round_up(max(2 * pad, 1), 16))
    # Right-halo length: smallest multiple of 16 >= 2*pad that divides tt, so
    # the halo BlockSpec has a clean block-index map ((t+1) * tt // h).
    min_h = max(16, _round_up(2 * pad, 16))
    h = next(hh for hh in range(min_h, tt + 1, 16) if tt % hh == 0)

    n_t = -(-T // tt)
    t_out = n_t * tt
    t_tot = t_out + h

    x_p = jnp.pad(x_ntc.astype(jnp.bfloat16),
                  ((0, 0), (pad, t_tot - T - pad), (0, 0)))     # (B, t_tot, Cin)

    # ---- pack weights: folded, fused, MXU-friendly, bf16 (biases stay f32) ----
    # nn.Conv1d weight (2G, Cin, K): first G out-channels = gate, last G = filter.
    w_conv_f = (jnp.transpose(w_conv, (2, 1, 0))
                .reshape(K * Cin, 2 * G).astype(jnp.bfloat16))  # (K*Cin, 2G)
    b_conv_f = b_conv.astype(jnp.float32)[None, :]              # (1, 2G)

    cout = Cres + Cskip
    cout_128 = _round_up(cout, 128)
    # Lane-pad to 128 only when the padding tax is small (<= 25% extra lanes).
    cout_p = cout_128 if cout_128 * 4 <= cout * 5 else cout
    wr = jnp.transpose(w_res[:, :, 0], (1, 0))                  # (G, Cres)
    ws = jnp.transpose(w_skip[:, :, 0], (1, 0))                 # (G, Cskip)
    w_proj = (jnp.zeros((G, cout_p), jnp.float32)
              .at[:, :Cres].set(wr).at[:, Cres:cout].set(ws)
              .astype(jnp.bfloat16))
    b_proj = (jnp.zeros((1, cout_p), jnp.float32)
              .at[0, :Cres].set(b_res).at[0, Cres:cout].set(b_skip))

    kernel = functools.partial(
        _dilated_conv_block_kernel, kernel_size=kernel_size, dilation=dilation,
        pad=pad, tt=tt, gate_ch=G, cres=Cres, cout_p=cout_p)

    out = pl.pallas_call(
        kernel,
        out_shape=jax.ShapeDtypeStruct((B, t_out, cout_p), jnp.bfloat16),
        grid=(B, n_t),
        in_specs=[
            pl.BlockSpec((1, tt, Cin), lambda b, t: (b, t, 0)),            # main tile
            pl.BlockSpec((1, h, Cin),
                         lambda b, t: (b, (t + 1) * (tt // h), 0)),        # halo tile
            pl.BlockSpec((K * Cin, 2 * G), lambda b, t: (0, 0)),           # conv W (resident)
            pl.BlockSpec((1, 2 * G), lambda b, t: (0, 0)),                 # conv b
            pl.BlockSpec((G, cout_p), lambda b, t: (0, 0)),                # proj W (resident)
            pl.BlockSpec((1, cout_p), lambda b, t: (0, 0)),                # proj b
        ],
        out_specs=pl.BlockSpec((1, tt, cout_p), lambda b, t: (b, t, 0)),
        compiler_params=pltpu.CompilerParams(
            dimension_semantics=("parallel", "parallel"),
            # 48 MiB: headroom over the 16/32 MiB defaults on v5e/v6e while
            # staying under v7x's 64 MiB physical VMEM.
            vmem_limit_bytes=48 * 1024 * 1024),
    )(x_p, x_p, w_conv_f, b_conv_f, w_proj, b_proj)

    out_t = out[:, :T, :]                      # drop time padding once
    res_ntc = out_t[:, :, :Cres]
    skip_ntc = out_t[:, :, Cres:cout]          # drop lane padding
    return res_ntc, skip_ntc


@functools.partial(jax.jit,
                   static_argnames=("kernel_size", "dilation", "time_tile"))
def dilated_conv_block(x_nct, params, *, kernel_size, dilation, time_tile=512):
    """PyTorch-facing wrapper: x_nct (B, Cres, T) f32 -> (res, skip) in NCT f32."""
    x_ntc = jnp.transpose(x_nct, (0, 2, 1))
    res_ntc, skip_ntc = dilated_conv_block_ntc(
        x_ntc, params, kernel_size=kernel_size, dilation=dilation,
        time_tile=time_tile)
    res = jnp.transpose(res_ntc, (0, 2, 1)).astype(jnp.float32)
    skip = jnp.transpose(skip_ntc, (0, 2, 1)).astype(jnp.float32)
    return res, skip


def init_params(key, residual_channels, gate_channels, skip_channels,
                kernel_size):
    """Deterministic synthetic parameters in PyTorch Conv1d layouts."""
    ks = jax.random.split(key, 6)
    s = 0.1
    w_conv = s * jax.random.normal(
        ks[0], (2 * gate_channels, residual_channels, kernel_size), jnp.float32)
    b_conv = s * jax.random.normal(ks[1], (2 * gate_channels,), jnp.float32)
    w_res = s * jax.random.normal(
        ks[2], (residual_channels, gate_channels, 1), jnp.float32)
    b_res = s * jax.random.normal(ks[3], (residual_channels,), jnp.float32)
    w_skip = s * jax.random.normal(
        ks[4], (skip_channels, gate_channels, 1), jnp.float32)
    b_skip = s * jax.random.normal(ks[5], (skip_channels,), jnp.float32)
    return (w_conv, b_conv, w_res, b_res, w_skip, b_skip)


def _reference(x_nct, params, *, kernel_size, dilation):
    """Pure-JAX reference mirroring the kernel's bf16-in / f32-acc / bf16-out numerics."""
    w_conv, b_conv, w_res, b_res, w_skip, b_skip = params
    B, Cin, T = x_nct.shape
    G = w_conv.shape[0] // 2
    pad = (kernel_size * dilation - dilation) // 2
    q = lambda a: a.astype(jnp.bfloat16).astype(jnp.float32)   # bf16 quantize

    x_ntc = q(jnp.transpose(x_nct, (0, 2, 1)))
    x_pad = jnp.pad(x_ntc, ((0, 0), (pad, pad), (0, 0)))
    w_t = q(jnp.transpose(w_conv, (2, 1, 0)))                   # (K, Cin, 2G)

    acc = jnp.broadcast_to(b_conv.astype(jnp.float32), (B, T, 2 * G))
    for tap in range(kernel_size):
        xs = x_pad[:, tap * dilation: tap * dilation + T, :]
        acc = acc + jnp.einsum("btc,cg->btg", xs, w_t[tap],
                               preferred_element_type=jnp.float32)
    gate, filt = acc[..., :G], acc[..., G:]
    act = q(jnp.tanh(filt) * jax.nn.sigmoid(gate))
    wr = q(jnp.transpose(w_res[:, :, 0], (1, 0)))
    ws = q(jnp.transpose(w_skip[:, :, 0], (1, 0)))
    res = q(jnp.einsum("btg,gc->btc", act, wr,
                       preferred_element_type=jnp.float32) + b_res + x_ntc)
    skip = q(jnp.einsum("btg,gc->btc", act, ws,
                        preferred_element_type=jnp.float32) + b_skip)
    return jnp.transpose(res, (0, 2, 1)), jnp.transpose(skip, (0, 2, 1))


if __name__ == "__main__":
    B = 2
    residual_channels = 16
    gate_channels = 32
    skip_channels = 16
    kernel_size = 3
    dilation = 2
    T = 48

    key = jax.random.PRNGKey(0)
    kx, kp = jax.random.split(key)
    x = jax.random.normal(kx, (B, residual_channels, T), jnp.float32)
    params = init_params(kp, residual_channels, gate_channels, skip_channels,
                         kernel_size)

    # time_tile=32 -> 2 time tiles x 2 batches = 4 parallel grid steps,
    # exercising the main + halo blocking.
    res_out, skip_out = dilated_conv_block(
        x, params, kernel_size=kernel_size, dilation=dilation, time_tile=32)
    jax.block_until_ready((res_out, skip_out))

    res_ref, skip_ref = _reference(
        x, params, kernel_size=kernel_size, dilation=dilation)
    assert res_out.shape == (B, residual_channels, T)
    assert skip_out.shape == (B, skip_channels, T)
    assert jnp.allclose(res_out, res_ref, atol=3e-2, rtol=3e-2), \
        float(jnp.max(jnp.abs(res_out - res_ref)))
    assert jnp.allclose(skip_out, skip_ref, atol=3e-2, rtol=3e-2), \
        float(jnp.max(jnp.abs(skip_out - skip_ref)))

    print("KERNEL_OK")
</pallas_src>

<mosaic_0001>
module attributes {stable_mosaic.version = 11 : i64} {
  func.func @_dilated_conv_block_kernel(%arg0: i32, %arg1: i32, %arg2: memref<1x32x16xbf16, #tpu.memory_space<vmem>>, %arg3: memref<1x16x16xbf16, #tpu.memory_space<vmem>>, %arg4: memref<48x64xbf16, #tpu.memory_space<vmem>>, %arg5: memref<1x64xf32, #tpu.memory_space<vmem>>, %arg6: memref<32x32xbf16, #tpu.memory_space<vmem>>, %arg7: memref<1x32xf32, #tpu.memory_space<vmem>>, %arg8: memref<1x32x32xbf16, #tpu.memory_space<vmem>>) attributes {dimension_semantics = [#tpu.dimension_semantics<parallel>, #tpu.dimension_semantics<parallel>], iteration_bounds = array<i64: 2, 2>, scalar_prefetch = 0 : i64, scratch_operands = 0 : i64, tpu.core_type = #tpu.core_type<tc>, window_params = [{transform_indices = @transform_0, window_bounds = array<i64: 1, 32, 16>}, {transform_indices = @transform_1, window_bounds = array<i64: 1, 16, 16>}, {pipeline_mode = #tpu.pipeline_mode<synchronous>, transform_indices = @transform_2, window_bounds = array<i64: 48, 64>}, {pipeline_mode = #tpu.pipeline_mode<synchronous>, transform_indices = @transform_3, window_bounds = array<i64: 1, 64>}, {pipeline_mode = #tpu.pipeline_mode<synchronous>, transform_indices = @transform_4, window_bounds = array<i64: 32, 32>}, {pipeline_mode = #tpu.pipeline_mode<synchronous>, transform_indices = @transform_5, window_bounds = array<i64: 1, 32>}, {transform_indices = @transform_6, window_bounds = array<i64: 1, 32, 32>}]} {
    %c0 = arith.constant 0 : index
    %c0_0 = arith.constant 0 : index
    %c0_1 = arith.constant 0 : index
    %0 = vector.load %arg2[%c0, %c0_0, %c0_1] : memref<1x32x16xbf16, #tpu.memory_space<vmem>>, vector<1x32x16xbf16>
    %1 = vector.shape_cast %0 : vector<1x32x16xbf16> to vector<32x16xbf16>
    %c0_2 = arith.constant 0 : index
    %c0_3 = arith.constant 0 : index
    %c0_4 = arith.constant 0 : index
    %2 = vector.load %arg3[%c0_2, %c0_3, %c0_4] : memref<1x16x16xbf16, #tpu.memory_space<vmem>>, vector<1x16x16xbf16>
    %3 = vector.shape_cast %2 : vector<1x16x16xbf16> to vector<16x16xbf16>
    %4 = tpu.concatenate %1, %3 in 0 : vector<32x16xbf16>, vector<16x16xbf16> -> vector<48x16xbf16>
    %5 = vector.extract_strided_slice %4 {offsets = [0, 0], sizes = [32, 16], strides = [1, 1]} : vector<48x16xbf16> to vector<32x16xbf16>
    %6 = vector.extract_strided_slice %4 {offsets = [2, 0], sizes = [32, 16], strides = [1, 1]} : vector<48x16xbf16> to vector<32x16xbf16>
    %7 = vector.extract_strided_slice %4 {offsets = [4, 0], sizes = [32, 16], strides = [1, 1]} : vector<48x16xbf16> to vector<32x16xbf16>
    %8 = tpu.concatenate %5, %6, %7 in 1 : vector<32x16xbf16>, vector<32x16xbf16>, vector<32x16xbf16> -> vector<32x48xbf16>
    %c0_5 = arith.constant 0 : index
    %c0_6 = arith.constant 0 : index
    %9 = vector.load %arg4[%c0_5, %c0_6] : memref<48x64xbf16, #tpu.memory_space<vmem>>, vector<48x64xbf16>
    %cst = arith.constant dense<0.000000e+00> : vector<32x64xf32>
    %10 = tpu.matmul %8, %9, %cst {dimension_numbers = #tpu.dot_dimension_numbers<[1], [0], [0], [1], [0, 0, 1, 1], [], []>} : vector<32x48xbf16>, vector<48x64xbf16>, vector<32x64xf32> -> vector<32x64xf32>
    %c0_7 = arith.constant 0 : index
    %c0_8 = arith.constant 0 : index
    %11 = vector.load %arg5[%c0_7, %c0_8] : memref<1x64xf32, #tpu.memory_space<vmem>>, vector<1x64xf32>
    %12 = vector.shape_cast %11 : vector<1x64xf32> to vector<64xf32>
    %13 = vector.shape_cast %12 : vector<64xf32> to vector<1x64xf32>
    %14 = vector.broadcast %13 : vector<1x64xf32> to vector<32x64xf32>
    %15 = arith.addf %10, %14 : vector<32x64xf32>
    %16 = vector.extract_strided_slice %15 {offsets = [0, 0], sizes = [32, 32], strides = [1, 1]} : vector<32x64xf32> to vector<32x32xf32>
    %17 = vector.extract_strided_slice %15 {offsets = [0, 32], sizes = [32, 32], strides = [1, 1]} : vector<32x64xf32> to vector<32x32xf32>
    %18 = math.tanh %17 : vector<32x32xf32>
    %cst_9 = arith.constant 5.000000e-01 : f32
    %19 = vector.broadcast %cst_9 : f32 to vector<32x32xf32>
    %20 = arith.mulf %19, %16 : vector<32x32xf32>
    %21 = math.tanh %20 : vector<32x32xf32>
    %cst_10 = arith.constant 5.000000e-01 : f32
    %22 = vector.broadcast %cst_10 : f32 to vector<32x32xf32>
    %23 = arith.mulf %22, %21 : vector<32x32xf32>
    %cst_11 = arith.constant 5.000000e-01 : f32
    %24 = vector.broadcast %cst_11 : f32 to vector<32x32xf32>
    %25 = arith.addf %23, %24 : vector<32x32xf32>
    %26 = arith.mulf %18, %25 : vector<32x32xf32>
    %27 = arith.truncf %26 : vector<32x32xf32> to vector<32x32xbf16>
    %c0_12 = arith.constant 0 : index
    %c0_13 = arith.constant 0 : index
    %28 = vector.load %arg6[%c0_12, %c0_13] : memref<32x32xbf16, #tpu.memory_space<vmem>>, vector<32x32xbf16>
    %cst_14 = arith.constant dense<0.000000e+00> : vector<32x32xf32>
    %29 = tpu.matmul %27, %28, %cst_14 {dimension_numbers = #tpu.dot_dimension_numbers<[1], [0], [0], [1], [0, 0, 1, 1], [], []>} : vector<32x32xbf16>, vector<32x32xbf16>, vector<32x32xf32> -> vector<32x32xf32>
    %30 = vector.extract_strided_slice %4 {offsets = [2, 0], sizes = [32, 16], strides = [1, 1]} : vector<48x16xbf16> to vector<32x16xbf16>
    %31 = arith.extf %30 : vector<32x16xbf16> to vector<32x16xf32>
    %cst_15 = arith.constant 0.000000e+00 : f32
    %32 = vector.broadcast %cst_15 : f32 to vector<32x16xf32>
    %33 = tpu.concatenate %31, %32 in 1 : vector<32x16xf32>, vector<32x16xf32> -> vector<32x32xf32>
    %34 = arith.addf %29, %33 : vector<32x32xf32>
    %c0_16 = arith.constant 0 : index
    %c0_17 = arith.constant 0 : index
    %35 = vector.load %arg7[%c0_16, %c0_17] : memref<1x32xf32, #tpu.memory_space<vmem>>, vector<1x32xf32>
    %36 = vector.shape_cast %35 : vector<1x32xf32> to vector<32xf32>
    %37 = vector.shape_cast %36 : vector<32xf32> to vector<1x32xf32>
    %38 = vector.broadcast %37 : vector<1x32xf32> to vector<32x32xf32>
    %39 = arith.addf %34, %38 : vector<32x32xf32>
    %40 = arith.truncf %39 : vector<32x32xf32> to vector<32x32xbf16>
    %c0_18 = arith.constant 0 : index
    %c0_19 = arith.constant 0 : index
    %c0_20 = arith.constant 0 : index
    %41 = vector.load %arg8[%c0_18, %c0_19, %c0_20] : memref<1x32x32xbf16, #tpu.memory_space<vmem>>, vector<1x32x32xbf16>
    %42 = vector.shape_cast %41 : vector<1x32x32xbf16> to vector<32x32xbf16>
    %43 = vector.shape_cast %40 : vector<32x32xbf16> to vector<1x32x32xbf16>
    tpu.vector_store %arg8[%c0_18, %c0_19, %c0_20], %43 {strides = array<i32>} : memref<1x32x32xbf16, #tpu.memory_space<vmem>>, vector<1x32x32xbf16>,
    return
  }
  func.func @transform_0(%arg0: i32, %arg1: i32) -> (i32, i32, i32) {
    %c0_i32 = arith.constant 0 : i32
    %c0_i32_0 = arith.constant 0 : i32
    return %arg0, %arg1, %c0_i32 : i32, i32, i32
  }
  func.func @transform_1(%arg0: i32, %arg1: i32) -> (i32, i32, i32) {
    %c1_i32 = arith.constant 1 : i32
    %0 = arith.addi %arg1, %c1_i32 : i32
    %c2_i32 = arith.constant 2 : i32
    %1 = arith.muli %0, %c2_i32 : i32
    %c0_i32 = arith.constant 0 : i32
    %c0_i32_0 = arith.constant 0 : i32
    return %arg0, %1, %c0_i32 : i32, i32, i32
  }
  func.func @transform_2(%arg0: i32, %arg1: i32) -> (i32, i32) {
    %c0_i32 = arith.constant 0 : i32
    %c0_i32_0 = arith.constant 0 : i32
    %c0_i32_1 = arith.constant 0 : i32
    return %c0_i32, %c0_i32_0 : i32, i32
  }
  func.func @transform_3(%arg0: i32, %arg1: i32) -> (i32, i32) {
    %c0_i32 = arith.constant 0 : i32
    %c0_i32_0 = arith.constant 0 : i32
    %c0_i32_1 = arith.constant 0 : i32
    return %c0_i32, %c0_i32_0 : i32, i32
  }
  func.func @transform_4(%arg0: i32, %arg1: i32) -> (i32, i32) {
    %c0_i32 = arith.constant 0 : i32
    %c0_i32_0 = arith.constant 0 : i32
    %c0_i32_1 = arith.constant 0 : i32
    return %c0_i32, %c0_i32_0 : i32, i32
  }
  func.func @transform_5(%arg0: i32, %arg1: i32) -> (i32, i32) {
    %c0_i32 = arith.constant 0 : i32
    %c0_i32_0 = arith.constant 0 : i32
    %c0_i32_1 = arith.constant 0 : i32
    return %c0_i32, %c0_i32_0 : i32, i32
  }
  func.func @transform_6(%arg0: i32, %arg1: i32) -> (i32, i32, i32) {
    %c0_i32 = arith.constant 0 : i32
    %c0_i32_0 = arith.constant 0 : i32
    return %arg0, %arg1, %c0_i32 : i32, i32, i32
  }
}

</mosaic_0001>

<bundles_post_ra>
// kernel: dilated_conv_block_ntc.1
= control target key start
LH: loop header
LB: loop body
LE: loop exit
PB: predicated region body
PF: predicated region fallthrough
CT: control target
= control target key end

     0   :  { %s1012_s21 = smov 0   ;;  %s1014_s22 = smov 0   ;;  %s1146_s0 = inlined_call_operand.vmem [shape: bf16[2,80,16], index: 0, kind: input, shape index: {}, may-alias: {0,1}]   ;;  %s1147_s1 = inlined_call_operand.vmem [shape: bf16[2,80,16], index: 1, kind: input, shape index: {}, may-alias: {0,1}]   ;;  %s1148_s2 = inlined_call_operand.vmem [shape: bf16[48,64], index: 2, kind: input, shape index: {}]   ;;  %s1149_s3 = inlined_call_operand.vmem [shape: f32[1,64], index: 3, kind: input, shape index: {}]   ;;  %s1150_s4 = inlined_call_operand.vmem [shape: bf16[32,32], index: 4, kind: input, shape index: {}]   ;;  %s1151_s5 = inlined_call_operand.vmem [shape: f32[1,32], index: 5, kind: input, shape index: {}]   ;;  %s1152_s6 = inlined_call_operand.vmem [shape: bf16[2,64,32], index: 6, kind: output, shape index: {}]  }
   0x1   :  { %s1016_s23 = smov 0   ;;  %s1018_s24 = smov 0  }
   0x2   :  { %s1020_s25 = smov 0  }
   0x3 LB: > { %s25_s26 = sadd.s32 1, %s964_s23  ;;  %s28_s27 = sadd.s32 1, %s968_s24  ;;  %s972_s25 = sphi %s1020_s25, %s16_s25   ;;  %s968_s24 = sphi %s1018_s24, %s1156_s24   ;;  %s964_s23 = sphi %s1016_s23, %s1155_s23   ;;  %s960_s22 = sphi %s1014_s22, %s1154_s22   ;;  %s956_s21 = sphi %s1012_s21, %s1153_s21  }
   0x4   : > { %p26_p0 = scmp.ge.s32.totalorder %s25_s26, 2  ;;  %p797_p1 = scmp.ge.s32.totalorder %s972_s25, 1 }
   0x5   : > { %p266_p2 = scmp.lt.s32.totalorder %s972_s25, 5 }
   0x6   : > { %s1158_s26 = smov (%p26_p0, %s25_s26), 0  ;;  %s1160_s27 = smov (!%p26_p0, %s28_s27), %s968_s24 }
   0x7   : > { %p267_p3 = pnand %p797_p1, %p266_p2  ;;  %p30_p4 = scmp.ge.s32.totalorder %s1160_s27, 2 }
   0x8   : > { %s1042_s28 = sshll.u32 (!%p267_p3), %s956_s21, 2  ;;  %p324_p5 = scmp.lt.s32.totalorder (!%p267_p3), %s960_s22, 1 }
   0x9   : > { %s1162_s27 = smov (%p30_p4, %s1160_s27), 0  ;;  %270 = sbr.rel (%p267_p3) target bundleno = 811 (0x32b), region = 44 }
   0xa   : > { %p326_p6 = scmp.lt.s32.totalorder (!%p267_p3), %s1042_s28, 9  ;;  %s838_s11 = sadd.s32 (!%p267_p3), 4, %s1042_s28 }
   0xb   : > { %p342_p7 = scmp.lt.s32.totalorder (!%p267_p3), %s838_s11, 9  ;;  %s974_s7 = smov (!%p267_p3), 16  }
   0xc   : > { %s975_s8 = smov (!%p267_p3), 32   ;;  %p354_p8 = scmp.lt.s32.totalorder (!%p267_p3), %s1042_s28, 7 }
   0xe   : > { %v913_v0 = vld [vmem:[%s1148_s2 + $0x10] sm:$0xff]   ;;  %v914_v1 = vld [vmem:[%s1148_s2 + $0x8] sm:$0xff]   ;;  %s1164_s22 = smov (!%p324_p5, %s960_s22), 1  ;;  %v915_v2 = vld [vmem:[%s1148_s2] sm:$0xff]   ;;  %s1166_s11 = smov (!%p342_p7, %s838_s11), 9  ;;  %vm386_vm0 = vcmask 1046528  }
   0xf   : > { %s327_s9 = scalar_select %p326_p6, %s1042_s28, 9  ;;  %848 = vmatprep.subr.bf16.mxu0 %v913_v0  ;;  %vm396_vm1 = vcmask 1045504   ;;  %vm406_vm2 = vcmask 130048   ;;  %vm413_vm3 = vcmask 261120   ;;  %vm449_vm4 = vcmask 392192   ;;  %v916_v44 = vld [vmem:[%s1150_s4 + $0x8] sm:$0xff]  }
  0x10   : > { %s866_s10 = smul.u32 10, %s1164_s22  ;;  %849 = vmatpush3.bf16.msra.mxu0 %v913_v0  ;;  %v809_v24 = vld [vmem:[%s1149_s3] ss:$0 sm:$0xff]  ;;  %858 = vmatprep.subr.bf16.mxu1 %v916_v44  ;;  %s1168_s28 = smov (!%p354_p8, %s1042_s28), 7  ;;  %vm678_vm5 = vcmask 257024  }
  0x11   : > { %850 = vmatprep.subr.bf16.mxu0 %v914_v1  ;;  %859 = vmatpush3.bf16.msra.mxu1 %v916_v44  ;;  %v917_v50 = vld [vmem:[%s1150_s4] sm:$0xff]   ;;  %s804_s16 = sshll.u32 %s1164_s22, 3 }
  0x12   : > { %s329_s14 = sadd.s32 %s866_s10, %s327_s9  ;;  %s345_s19 = sadd.s32 %s866_s10, %s1166_s11  ;;  %860 = vmatprep.subr.bf16.mxu1 %v917_v50 }
  0x13   : > { %s799_s15 = sshll.u32 %s329_s14, 2  ;;  %s802_s20 = sshll.u32 %s345_s19, 2 }
  0x14   : > { %s331_s18 = scalar_lea.vmem %s1146_s0, %s799_s15  ;;  %851 = vmatpush3.bf16.msra.mxu0 %v914_v1  ;;  %s347_s30 = scalar_lea.vmem %s1147_s1, %s802_s20 }
  0x15   : > { %852 = vmatprep.subr.bf16.mxu0 %v915_v2  ;;  %v1062_v3 = vld [vmem:[%s331_s18] sm:$0xff]   ;;  %v1064_v4 = vld [vmem:[%s331_s18 + $0x8] sm:$0xff]   ;;  %861 = vmatpush3.bf16.msra.mxu1 %v917_v50  ;;  %s976_s15 = smov 96   ;;  %s357_s17 = sadd.s32 %s804_s16, %s1168_s28 }
  0x16   : > { %v387_v5 = vrot.slane %v1062_v3, 1  ;;  %v388_v6 = vrot.slane %v1064_v4, 1  ;;  %v397_v7 = vrot.slane %v1062_v3, 2  ;;  %v398_v8 = vrot.slane %v1064_v4, 2  ;;  %v1076_v11 = vld [vmem:[%s347_s30] sm:$0xff]   ;;  %s805_s20 = sshll.u32 %s357_s17, 2 }
  0x17   : > { %v390_v12 = vrot.slane %v1076_v11, 1  ;;  %v400_v13 = vrot.slane %v1076_v11, 2  ;;  %s359_s28 = scalar_lea.vmem %s1152_s6, %s805_s20 }
  0x18   : > { %853 = vmatpush3.bf16.msra.mxu0 %v915_v2  ;;  %v389_v9 = vsel %vm386_vm0, %v387_v5, %v388_v6  ;;  %v399_v10 = vsel %vm396_vm1, %v397_v7, %v398_v8  ;;  %v551_v5 = vunpack.c.l.bf16 %v1064_v4  ;;  %v549_v7 = vunpack.c.l.bf16 %v1062_v3 }
  0x19   : > { %392 = vrot.lane.b32.xlu0 %v389_v9, %s974_s7  ;;  %402 = vrot.lane.b32.xlu1 %v399_v10, %s975_s8  ;;  %v391_v14 = vsel %vm386_vm0, %v388_v6, %v390_v12  ;;  %v401_v15 = vsel %vm396_vm1, %v398_v8, %v400_v13  ;;  %v552_v6 = vunpack.c.h.bf16 %v1064_v4  ;;  %v550_v8 = vunpack.c.h.bf16 %v1062_v3 }
  0x1a   : > { %v556_v9 = vsel %vm406_vm2, %v551_v5, 0.0  ;;  %v553_v12 = vunpack.c.l.bf16 %v1076_v11  ;;  %v554_v13 = vsel %vm406_vm2, %v549_v7, 0.0  ;;  %v819_v11 = vld [vmem:[%s1151_s5] ss:$0 sm:$0xff] }
  0x1b   : > { %v557_v10 = vsel %vm406_vm2, %v552_v6, 0.0 }
  0x1d   : > { %394 = vrot.lane.b32.xlu0 %v391_v14, %s974_s7  ;;  %404 = vrot.lane.b32.xlu1 %v401_v15, %s975_s8  ;;  %v555_v14 = vsel %vm406_vm2, %v550_v8, 0.0  ;;  %v586_v15 = vrot.slane %v556_v9, 2 }
  0x8b   : > { %v393_v16 = vpop.permute.xlu0 %392  ;;  %v403_v17 = vpop.permute.xlu1 %402 }
  0x8c   : > { %v409_v18 = vsel %vm406_vm2, %v1062_v3, %v393_v16  ;;  %v588_v16 = vrot.slane %v557_v10, 2 }
  0x8d   : > { %v415_v19 = vsel %vm413_vm3, %v409_v18, %v403_v17  ;;  %v583_v17 = vrot.slane %v554_v13, 2  ;;  %v584_v18 = vrot.slane %v555_v14, 2 }
  0x8e   : > { %854 = vmatprep.mubr.msk.bf16.mxu0 %vm449_vm4, %v415_v19  ;;  %v589_v3 = vsel %vm396_vm1, %v586_v15, %v588_v16 }
  0x8f   : > { %v395_v20 = vpop.permute.xlu0 %394  ;;  %v405_v21 = vpop.permute.xlu1 %404 }
  0x90   : > { %v412_v22 = vsel %vm406_vm2, %v1064_v4, %v395_v20  ;;  %v558_v4 = vsel %vm406_vm2, %v553_v12, 0.0 }
  0x91   : > { %v417_v23 = vsel %vm413_vm3, %v412_v22, %v405_v21  ;;  %v590_v19 = vrot.slane %v558_v4, 2  ;;  %v585_v21 = vsel %vm396_vm1, %v583_v17, %v584_v18 }
  0x92   : > { %855 = vmatmul.mubr.msk.bf16.vlgmr.msra.gmra.mxu0 %vm449_vm4, %v417_v23 }
 0x152   : > { %v856_v25 = vpop.f32.mrf.mxu0 }
 0x153   : > { %v497_v26 = vadd.f32 %v856_v25, %v809_v24 }
 0x154   : > { %v488_v27 = vpop.f32.mrf.mxu0 }
 0x155   : > { %v509_v28 = vmul.f32 0.5, %v497_v26  ;;  %v489_v29 = vadd.f32 %v809_v24, %v488_v27 }
 0x156   : > { %v857_v30 = vpop.f32.mrf.mxu0 }
 0x157   : > { %v507_v31 = vmul.f32 0.5, %v489_v29  ;;  %v500_v32 = vadd.f32 %v857_v30, %v809_v24  ;;  %918 = vtanh.f32 %v509_v28  ;;  %v587_v28 = vsel %vm396_vm1, %v584_v18, %v586_v15 }
 0x158   : > { %v491_v33 = vpop.f32.mrf.mxu0 }
 0x159   : > { %920 = vtanh.f32 %v507_v31  ;;  %v510_v34 = vmul.f32 0.5, %v500_v32  ;;  %v492_v35 = vadd.f32 %v809_v24, %v491_v33  ;;  %v591_v24 = vsel %vm396_vm1, %v588_v16, %v590_v19 }
 0x15b   : > { %v508_v36 = vmul.f32 0.5, %v492_v35  ;;  %922 = vtanh.f32 %v510_v34 }
 0x15d   : > { %924 = vtanh.f32 %v508_v36 }
 0x15e   : > { %926 = vtanh.f32 %v489_v29 }
 0x15f   : > { %928 = vtanh.f32 %v492_v35 }
 0x160   : > { %930 = vtanh.f32 %v497_v26 }
 0x161   : > { %932 = vtanh.f32 %v500_v32 }
 0x164   : > { %v919_v37 = vpop.eup %918 }
 0x165   : > { %v517_v42 = vmul.f32 0.5, %v919_v37 }
 0x166   : > { %v921_v38 = vpop.eup %920 }
 0x167   : > { %v515_v39 = vmul.f32 0.5, %v921_v38  ;;  %v521_v47 = vadd.f32 0.5, %v517_v42 }
 0x168   : > { %v923_v40 = vpop.eup %922 }
 0x169   : > { %v519_v41 = vadd.f32 0.5, %v515_v39  ;;  %v518_v48 = vmul.f32 0.5, %v923_v40 }
 0x16a   : > { %v925_v43 = vpop.eup %924 }
 0x16b   : > { %527 = vrot.lane.b32.xlu0 %v519_v41, %s975_s8  ;;  %v516_v45 = vmul.f32 0.5, %v925_v43  ;;  %v522_v49 = vadd.f32 0.5, %v518_v48  ;;  %v927_v52 = vpop.eup %926 }
 0x16c   : > { %v929_v53 = vpop.eup %928 }
 0x16d   : > { %v520_v46 = vadd.f32 0.5, %v516_v45  ;;  %v931_v58 = vpop.eup %930 }
 0x16e   : > { %v933_v60 = vpop.eup %932 }
 0x16f   : > { %529 = vrot.lane.b32.xlu1 %v520_v46, %s975_s8  ;;  %531 = vrot.lane.b32.xlu0 %v521_v47, %s975_s8 }
 0x173   : > { %533 = vrot.lane.b32.xlu1 %v522_v49, %s975_s8 }
 0x1dd   : > { %v528_v51 = vpop.permute.xlu0 %527 }
 0x1de   : > { %v539_v55 = vmul.f32 %v927_v52, %v528_v51 }
 0x1e1   : > { %v530_v54 = vpop.permute.xlu1 %529  ;;  %v532_v57 = vpop.permute.xlu0 %531 }
 0x1e2   : > { %v540_v56 = vmul.f32 %v929_v53, %v530_v54  ;;  %v541_v62 = vmul.f32 %v931_v58, %v532_v57 }
 0x1e4   : > { %v543_v59 = vpack.c.bf16 %v540_v56, %v539_v55 }
 0x1e5   : > { %v534_v61 = vpop.permute.xlu1 %533 }
 0x1e6   : > { %v542_v63 = vmul.f32 %v933_v60, %v534_v61  ;;  %561 = vrot.lane.b32.xlu0 %v543_v59, %s976_s15 }
 0x1e8   : > { %v544_v0 = vpack.c.bf16 %v542_v63, %v541_v62 }
 0x1ea   : > { %563 = vrot.lane.b32.xlu1 %v544_v0, %s976_s15 }
 0x258   : > { %v562_v1 = vpop.permute.xlu0 %561 }
 0x259   : > { %862 = vmatprep.mubr.msk.bf16.mxu1 %vm413_vm3, %v562_v1 }
 0x25c   : > { %v564_v2 = vpop.permute.xlu1 %563 }
 0x25d   : > { %863 = vmatmul.mubr.msk.bf16.vlgmr.msra.gmra.mxu1 %vm413_vm3, %v564_v2 }
 0x31d   : > { %v864_v20 = vpop.f32.mrf.mxu1 }
 0x31e   : > { %v645_v22 = vadd.f32 %v864_v20, %v589_v3 }
 0x31f   : > { %v636_v23 = vpop.f32.mrf.mxu1 }
 0x320   : > { %v660_v25 = vadd.f32 %v819_v11, %v645_v22  ;;  %v637_v26 = vadd.f32 %v636_v23, %v585_v21 }
 0x321   : > { %v865_v27 = vpop.f32.mrf.mxu1 }
 0x322   : > { %v835_v29 = vpack.c.bf16 %v660_v25, %v660_v25  ;;  %v658_v30 = vadd.f32 %v819_v11, %v637_v26  ;;  %v648_v31 = vadd.f32 %v865_v27, %v591_v24 }
 0x323   : > { %v639_v32 = vpop.f32.mrf.mxu1 }
 0x324   : > { %681 = vst.msk [vmem:[%s359_s28 + $0x8] sm:$0xf] %vm678_vm5, %v835_v29  ;;  %v833_v33 = vpack.c.bf16 %v658_v30, %v658_v30  ;;  %v661_v34 = vadd.f32 %v819_v11, %v648_v31  ;;  %v640_v35 = vadd.f32 %v639_v32, %v587_v28 }
 0x326   : > { %679 = vst.msk [vmem:[%s359_s28] sm:$0xf] %vm678_vm5, %v833_v33  ;;  %v836_v36 = vpack.c.bf16 %v661_v34, %v661_v34  ;;  %v659_v37 = vadd.f32 %v819_v11, %v640_v35 }
 0x328   : > { %682 = vst.msk [vmem:[%s359_s28 + $0xc] sm:$0xf] %vm678_vm5, %v836_v36  ;;  %v834_v38 = vpack.c.bf16 %v659_v37, %v659_v37 }
 0x32a   : > { %680 = vst.msk [vmem:[%s359_s28 + $0x4] sm:$0xf] %vm678_vm5, %v834_v38 }
 0x32b PF: > { %s16_s25 = sadd.s32 1, %s972_s25   ;;  %s1153_s21 = smov %s964_s23 }
 0x32c   : > { %p13_p9 = scmp.ge.s32.totalorder %s16_s25, 6   ;;  %s1154_s22 = smov %s968_s24 }
 0x32d   : > { %s1155_s23 = smov %s1158_s26  ;;  %s1156_s24 = smov %s1162_s27 }
 0x32e   :  { %15 = sbr.rel (!%p13_p9) target bundleno = 3 (0x3), region = 77 }

</bundles_post_ra>
